<compile_context>
chip_gen: v5e
topology: v5e:2x2
jax: 0.10.0
libtpu: 0.0.40
codegen_flags: <defaults>
</compile_context>

<pallas_src>
import functools

import jax
import jax.numpy as jnp
from jax import lax
from jax.experimental import pallas as pl
from jax.experimental.pallas import tpu as pltpu

ALPHA = 0.25
GAMMA = 2.0
BETA = 1.0

SUBLANES = 8                      # f32 sublanes per vreg
LANES = 128                       # lane width
VREG_ELEMS = SUBLANES * LANES     # 1024 elements per (8, 128) strip


# --------------------------------------------------------------------------
# Best-effort hardware queries (conservative fallbacks keep all chips safe).
# --------------------------------------------------------------------------
def _query_tpu_info():
    try:
        return pltpu.get_tpu_info()
    except Exception:
        return None


def _vmem_capacity_bytes() -> int:
    info = _query_tpu_info()
    if info is not None:
        for name in ("vmem_capacity_bytes", "vmem_bytes"):
            v = getattr(info, name, None)
            if isinstance(v, int) and v > 0:
                return v
    return 64 << 20   # conservative: v7x per-TensorCore VMEM


def _tensorcores_per_chip() -> int:
    info = _query_tpu_info()
    if info is not None:
        for name in ("num_cores", "num_tensorcores", "num_cores_per_chip",
                     "tensorcores_per_chip", "cores_per_chip"):
            v = getattr(info, name, None)
            if isinstance(v, int) and v > 0:
                return v
    return 1          # conservative: single-TensorCore behaviour (v5e / v6e)


# --------------------------------------------------------------------------
# Elementwise equalized focal loss (used by the kernel and the JAX tail).
# --------------------------------------------------------------------------
def _efl_elementwise(x, t, alpha, gamma, beta):
    """Per-element equalized focal loss (mirrors the PyTorch forward)."""
    x = x.astype(jnp.float32)
    t = t.astype(jnp.float32)
    # Numerically stable BCE-with-logits: max(x,0) - x*t + log1p(exp(-|x|)).
    em = jnp.exp(-jnp.abs(x))                            # EUP 1
    bce = jnp.maximum(x, 0.0) - x * t + jnp.log1p(em)    # EUP 2 (log1p)
    pt = jnp.exp(-bce)                                   # EUP 3
    one_m_pt = 1.0 - pt

    g = float(gamma)
    if g.is_integer() and 0 <= int(g) <= 8:
        # Integer gamma (default 2): explicit VPU multiplies instead of
        # jnp.power (which costs log+exp on the EUP and risks log(0)).
        n = int(g)
        if n == 0:
            focal = jnp.ones_like(one_m_pt)
        else:
            focal = one_m_pt
            for _ in range(n - 1):
                focal = focal * one_m_pt
    else:
        # Fractional gamma: clamp so a tiny negative (1 - pt) from rounding
        # cannot produce NaN through the power.
        focal = jnp.power(jnp.maximum(one_m_pt, 0.0), g)

    eql = (1.0 - t + t * (1.0 / beta)) * t
    return (alpha * eql) * focal * bce


# --------------------------------------------------------------------------
# Pallas kernel: sum-reduce the elementwise loss over a (tile_strips, 8, 128)
# block into a resident (8, 128) per-core accumulator block.
# --------------------------------------------------------------------------
def _efl_kernel(x_ref, t_ref, out_ref, *, alpha, gamma, beta,
                tile_strips, blocks_per_core, total_strips, exact, unroll):
    i = pl.program_id(1)   # reduction axis ("arbitrary")

    @pl.when(i == 0)
    def _():
        out_ref[...] = jnp.zeros_like(out_ref)

    zero = jnp.zeros((SUBLANES, LANES), jnp.float32)

    def strip_body(s, acc):
        # x_ref[s] / t_ref[s] are single (8, 128) vreg-sized strips.  Looping
        # over strips keeps live intermediates to a handful of vregs instead
        # of materializing a full (tile_strips*8, 128) f32 temporary in VMEM.
        return acc + _efl_elementwise(x_ref[s], t_ref[s], alpha, gamma, beta)

    if exact:
        # The grid exactly tiles the aligned input: no masking anywhere.
        out_ref[...] += lax.fori_loop(0, tile_strips, strip_body, zero,
                                      unroll=unroll)
    else:
        c = pl.program_id(0)
        # Strip-granular index math: total_strips = numel/1024, so int32 is
        # safe for inputs up to ~2e12 elements.
        lin = c * blocks_per_core + i                  # unclamped block id
        remaining = total_strips - lin * tile_strips

        @pl.when(remaining >= tile_strips)             # steady state: full tile
        def _():
            out_ref[...] += lax.fori_loop(0, tile_strips, strip_body, zero,
                                          unroll=unroll)

        @pl.when(jnp.logical_and(remaining > 0, remaining < tile_strips))
        def _():                                       # ragged last tile
            out_ref[...] += lax.fori_loop(0, remaining, strip_body, zero)
        # remaining <= 0: overhang step of an uneven core split; the (clamped)
        # re-read block is ignored and the step contributes nothing.


# --------------------------------------------------------------------------
# Wrapper.
# --------------------------------------------------------------------------
def equalized_focal_loss(inputs, targets, alpha=ALPHA, gamma=GAMMA, beta=BETA,
                         max_tile_rows=None):
    assert inputs.shape == targets.shape
    n_total = int(inputs.size)
    assert n_total > 0

    x = inputs.reshape(-1)   # keep original dtype; widened to f32 on the VPU
    t = targets.reshape(-1)

    aligned = (n_total // VREG_ELEMS) * VREG_ELEMS
    tail = n_total - aligned

    total = jnp.float32(0.0)
    if tail:
        # < 1024-element ragged tail: tiny pure-JAX epilogue.  This replaces
        # the old full-array jnp.pad copy that roughly doubled HBM traffic
        # for shapes whose numel is not a multiple of 1024.
        total = total + jnp.sum(
            _efl_elementwise(x[aligned:], t[aligned:],
                             float(alpha), float(gamma), float(beta)))

    if aligned:
        total_strips = aligned // VREG_ELEMS
        x3 = x[:aligned].reshape(total_strips, SUBLANES, LANES)  # free reshape
        t3 = t[:aligned].reshape(total_strips, SUBLANES, LANES)

        # ----- Tile sizing (HBM-bound: biggest tile that safely fits VMEM) --
        bytes_per_strip = VREG_ELEMS * (x3.dtype.itemsize + t3.dtype.itemsize)
        vmem_cap = _vmem_capacity_bytes()
        # Double-buffered input budget: 32 MiB on 128-MiB VMEM parts
        # (v5e/v6e -> 16384 f32 rows/tile), 16 MiB on 64-MiB parts / unknown
        # (v7x -> 8192 f32 rows/tile).
        buf_budget = (32 << 20) if vmem_cap >= (96 << 20) else (16 << 20)
        max_strips = max(1, buf_budget // (2 * bytes_per_strip))
        if max_tile_rows is not None:
            max_strips = min(max_strips, max(1, int(max_tile_rows) // SUBLANES))
        tile_strips = min(total_strips, max_strips)
        n_blocks = pl.cdiv(total_strips, tile_strips)

        # ----- Optional 2-TensorCore split (only when it is real) -----------
        n_cores = _tensorcores_per_chip()
        num_splits = n_cores if (n_cores > 1 and n_blocks >= 2 * n_cores) else 1
        blocks_per_core = pl.cdiv(n_blocks, num_splits)
        exact = num_splits * blocks_per_core * tile_strips == total_strips

        in_buf_bytes = 2 * tile_strips * bytes_per_strip   # 2 pipeline buffers
        vmem_limit = int(min(vmem_cap, max(32 << 20, in_buf_bytes + (16 << 20))))

        kernel = functools.partial(
            _efl_kernel,
            alpha=float(alpha), gamma=float(gamma), beta=float(beta),
            tile_strips=tile_strips, blocks_per_core=blocks_per_core,
            total_strips=total_strips, exact=exact,
            unroll=min(8, tile_strips))

        def in_map(c, i):
            # Clamp so a (rare, at most one per core) overhang step of an
            # uneven split re-reads the last valid block; the kernel skips it.
            return (jnp.minimum(c * blocks_per_core + i, n_blocks - 1), 0, 0)

        core_sem = pltpu.CORE_PARALLEL if num_splits > 1 else pltpu.ARBITRARY

        partials = pl.pallas_call(
            kernel,
            out_shape=jax.ShapeDtypeStruct((num_splits * SUBLANES, LANES),
                                           jnp.float32),
            grid_spec=pltpu.PrefetchScalarGridSpec(
                num_scalar_prefetch=0,
                grid=(num_splits, blocks_per_core),
                in_specs=[
                    pl.BlockSpec((tile_strips, SUBLANES, LANES), in_map),
                    pl.BlockSpec((tile_strips, SUBLANES, LANES), in_map),
                ],
                out_specs=pl.BlockSpec((SUBLANES, LANES), lambda c, i: (c, 0)),
            ),
            compiler_params=pltpu.CompilerParams(
                dimension_semantics=(core_sem, pltpu.ARBITRARY),
                vmem_limit_bytes=vmem_limit),
            cost_estimate=pl.CostEstimate(
                flops=15 * aligned,
                transcendentals=3 * aligned,
                bytes_accessed=int(x3.size * x3.dtype.itemsize
                                   + t3.size * t3.dtype.itemsize
                                   + num_splits * SUBLANES * LANES * 4)),
        )(x3, t3)

        total = total + jnp.sum(partials)

    return total / jnp.float32(n_total)


# --------------------------------------------------------------------------
# Independent pure-JAX reference (mirrors the PyTorch module).
# --------------------------------------------------------------------------
def _reference(inputs, targets, alpha=ALPHA, gamma=GAMMA, beta=BETA):
    x = inputs.astype(jnp.float32)
    t = targets.astype(jnp.float32)
    bce = jnp.maximum(x, 0.0) - x * t + jnp.log1p(jnp.exp(-jnp.abs(x)))
    pt = jnp.exp(-bce)
    focal_term = jnp.power(1.0 - pt, gamma)
    eql_term = (1.0 - t + t * (1.0 / beta)) * t
    return jnp.mean(alpha * eql_term * focal_term * bce)


if __name__ == "__main__":
    key = jax.random.PRNGKey(0)
    k1, k2, k3, k4, k5, k6 = jax.random.split(key, 6)

    # 1) NCHW logits / soft targets, numel a multiple of 1024 (pure kernel path).
    x1 = jax.random.normal(k1, (2, 4, 16, 16), dtype=jnp.float32)
    t1 = jax.random.uniform(k2, (2, 4, 16, 16), dtype=jnp.float32)
    l1 = equalized_focal_loss(x1, t1)
    jax.block_until_ready(l1)
    r1 = _reference(x1, t1)
    assert jnp.allclose(l1, r1, rtol=1e-5, atol=1e-6), (l1, r1)

    # 2) Ragged shape: 1024-aligned prefix through the kernel + tiny JAX tail.
    x2 = jax.random.normal(k3, (3, 5, 7, 11), dtype=jnp.float32)
    t2 = jax.random.uniform(k4, (3, 5, 7, 11), dtype=jnp.float32)
    l2 = equalized_focal_loss(x2, t2)
    jax.block_until_ready(l2)
    r2 = _reference(x2, t2)
    assert jnp.allclose(l2, r2, rtol=1e-5, atol=1e-6), (l2, r2)

    # 3) Small forced tile: exercises the multi-block grid and the ragged
    #    last-tile branch inside the kernel.
    x3 = jax.random.normal(k5, (1, 40, 16, 9), dtype=jnp.float32)
    t3 = jax.random.uniform(k6, (1, 40, 16, 9), dtype=jnp.float32)
    l3 = equalized_focal_loss(x3, t3, max_tile_rows=16)
    jax.block_until_ready(l3)
    r3 = _reference(x3, t3)
    assert jnp.allclose(l3, r3, rtol=1e-5, atol=1e-6), (l3, r3)

    print("KERNEL_OK")
</pallas_src>

<mosaic_0001>
module attributes {stable_mosaic.version = 11 : i64} {
  func.func @_efl_kernel(%arg0: i32, %arg1: i32, %arg2: memref<2x8x128xf32, #tpu.memory_space<vmem>>, %arg3: memref<2x8x128xf32, #tpu.memory_space<vmem>>, %arg4: memref<8x128xf32, #tpu.memory_space<vmem>>) attributes {dimension_semantics = [#tpu.dimension_semantics<arbitrary>, #tpu.dimension_semantics<arbitrary>], iteration_bounds = array<i64: 1, 1>, scalar_prefetch = 0 : i64, scratch_operands = 0 : i64, tpu.core_type = #tpu.core_type<tc>, window_params = [{transform_indices = @transform_0, window_bounds = array<i64: 2, 8, 128>}, {transform_indices = @transform_1, window_bounds = array<i64: 2, 8, 128>}, {transform_indices = @transform_2, window_bounds = array<i64: 8, 128>}]} {
    %c0_i32 = arith.constant 0 : i32
    %0 = arith.cmpi eq, %arg1, %c0_i32 : i32
    %1 = arith.extui %0 : i1 to i32
    %c0_i32_0 = arith.constant 0 : i32
    %2 = arith.cmpi ne, %1, %c0_i32_0 : i32
    scf.if %2 {
      %cst_27 = arith.constant 0.000000e+00 : f32
      %73 = vector.broadcast %cst_27 : f32 to vector<8x128xf32>
      %c0_28 = arith.constant 0 : index
      %c0_29 = arith.constant 0 : index
      %74 = vector.load %arg4[%c0_28, %c0_29] : memref<8x128xf32, #tpu.memory_space<vmem>>, vector<8x128xf32>
      tpu.vector_store %arg4[%c0_28, %c0_29], %73 {strides = array<i32>} : memref<8x128xf32, #tpu.memory_space<vmem>>, vector<8x128xf32>,
    } else {
    }
    %cst = arith.constant 0.000000e+00 : f32
    %3 = vector.broadcast %cst : f32 to vector<8x128xf32>
    %c0 = arith.constant 0 : index
    %c0_1 = arith.constant 0 : index
    %4 = vector.load %arg4[%c0, %c0_1] : memref<8x128xf32, #tpu.memory_space<vmem>>, vector<8x128xf32>
    %c0_i32_2 = arith.constant 0 : i32
    %5 = arith.index_cast %c0_i32_2 : i32 to index
    %c0_3 = arith.constant 0 : index
    %c0_4 = arith.constant 0 : index
    %6 = vector.load %arg2[%5, %c0_3, %c0_4] : memref<2x8x128xf32, #tpu.memory_space<vmem>>, vector<1x8x128xf32>
    %7 = vector.shape_cast %6 : vector<1x8x128xf32> to vector<8x128xf32>
    %8 = arith.index_cast %c0_i32_2 : i32 to index
    %c0_5 = arith.constant 0 : index
    %c0_6 = arith.constant 0 : index
    %9 = vector.load %arg3[%8, %c0_5, %c0_6] : memref<2x8x128xf32, #tpu.memory_space<vmem>>, vector<1x8x128xf32>
    %10 = vector.shape_cast %9 : vector<1x8x128xf32> to vector<8x128xf32>
    %11 = math.absf %7 : vector<8x128xf32>
    %cst_7 = arith.constant 0.000000e+00 : f32
    %12 = vector.broadcast %cst_7 : f32 to vector<8x128xf32>
    %13 = arith.subf %12, %11 : vector<8x128xf32>
    %14 = math.exp %13 : vector<8x128xf32>
    %cst_8 = arith.constant 0.000000e+00 : f32
    %15 = vector.broadcast %cst_8 : f32 to vector<8x128xf32>
    %16 = arith.maximumf %7, %15 : vector<8x128xf32>
    %17 = arith.mulf %7, %10 : vector<8x128xf32>
    %18 = arith.subf %16, %17 : vector<8x128xf32>
    %19 = math.log1p %14 : vector<8x128xf32>
    %20 = arith.addf %18, %19 : vector<8x128xf32>
    %cst_9 = arith.constant 0.000000e+00 : f32
    %21 = vector.broadcast %cst_9 : f32 to vector<8x128xf32>
    %22 = arith.subf %21, %20 : vector<8x128xf32>
    %23 = math.exp %22 : vector<8x128xf32>
    %cst_10 = arith.constant 1.000000e+00 : f32
    %24 = vector.broadcast %cst_10 : f32 to vector<8x128xf32>
    %25 = arith.subf %24, %23 : vector<8x128xf32>
    %26 = arith.mulf %25, %25 : vector<8x128xf32>
    %cst_11 = arith.constant 1.000000e+00 : f32
    %27 = vector.broadcast %cst_11 : f32 to vector<8x128xf32>
    %28 = arith.subf %27, %10 : vector<8x128xf32>
    %cst_12 = arith.constant 1.000000e+00 : f32
    %29 = vector.broadcast %cst_12 : f32 to vector<8x128xf32>
    %30 = arith.mulf %10, %29 : vector<8x128xf32>
    %31 = arith.addf %28, %30 : vector<8x128xf32>
    %32 = arith.mulf %31, %10 : vector<8x128xf32>
    %cst_13 = arith.constant 2.500000e-01 : f32
    %33 = vector.broadcast %cst_13 : f32 to vector<8x128xf32>
    %34 = arith.mulf %33, %32 : vector<8x128xf32>
    %35 = arith.mulf %34, %26 : vector<8x128xf32>
    %36 = arith.mulf %35, %20 : vector<8x128xf32>
    %37 = arith.addf %3, %36 : vector<8x128xf32>
    %c1_i32 = arith.constant 1 : i32
    %38 = arith.index_cast %c1_i32 : i32 to index
    %c0_14 = arith.constant 0 : index
    %c0_15 = arith.constant 0 : index
    %39 = vector.load %arg2[%38, %c0_14, %c0_15] : memref<2x8x128xf32, #tpu.memory_space<vmem>>, vector<1x8x128xf32>
    %40 = vector.shape_cast %39 : vector<1x8x128xf32> to vector<8x128xf32>
    %41 = arith.index_cast %c1_i32 : i32 to index
    %c0_16 = arith.constant 0 : index
    %c0_17 = arith.constant 0 : index
    %42 = vector.load %arg3[%41, %c0_16, %c0_17] : memref<2x8x128xf32, #tpu.memory_space<vmem>>, vector<1x8x128xf32>
    %43 = vector.shape_cast %42 : vector<1x8x128xf32> to vector<8x128xf32>
    %44 = math.absf %40 : vector<8x128xf32>
    %cst_18 = arith.constant 0.000000e+00 : f32
    %45 = vector.broadcast %cst_18 : f32 to vector<8x128xf32>
    %46 = arith.subf %45, %44 : vector<8x128xf32>
    %47 = math.exp %46 : vector<8x128xf32>
    %cst_19 = arith.constant 0.000000e+00 : f32
    %48 = vector.broadcast %cst_19 : f32 to vector<8x128xf32>
    %49 = arith.maximumf %40, %48 : vector<8x128xf32>
    %50 = arith.mulf %40, %43 : vector<8x128xf32>
    %51 = arith.subf %49, %50 : vector<8x128xf32>
    %52 = math.log1p %47 : vector<8x128xf32>
    %53 = arith.addf %51, %52 : vector<8x128xf32>
    %cst_20 = arith.constant 0.000000e+00 : f32
    %54 = vector.broadcast %cst_20 : f32 to vector<8x128xf32>
    %55 = arith.subf %54, %53 : vector<8x128xf32>
    %56 = math.exp %55 : vector<8x128xf32>
    %cst_21 = arith.constant 1.000000e+00 : f32
    %57 = vector.broadcast %cst_21 : f32 to vector<8x128xf32>
    %58 = arith.subf %57, %56 : vector<8x128xf32>
    %59 = arith.mulf %58, %58 : vector<8x128xf32>
    %cst_22 = arith.constant 1.000000e+00 : f32
    %60 = vector.broadcast %cst_22 : f32 to vector<8x128xf32>
    %61 = arith.subf %60, %43 : vector<8x128xf32>
    %cst_23 = arith.constant 1.000000e+00 : f32
    %62 = vector.broadcast %cst_23 : f32 to vector<8x128xf32>
    %63 = arith.mulf %43, %62 : vector<8x128xf32>
    %64 = arith.addf %61, %63 : vector<8x128xf32>
    %65 = arith.mulf %64, %43 : vector<8x128xf32>
    %cst_24 = arith.constant 2.500000e-01 : f32
    %66 = vector.broadcast %cst_24 : f32 to vector<8x128xf32>
    %67 = arith.mulf %66, %65 : vector<8x128xf32>
    %68 = arith.mulf %67, %59 : vector<8x128xf32>
    %69 = arith.mulf %68, %53 : vector<8x128xf32>
    %70 = arith.addf %37, %69 : vector<8x128xf32>
    %c2_i32 = arith.constant 2 : i32
    %71 = arith.addf %4, %70 : vector<8x128xf32>
    %c0_25 = arith.constant 0 : index
    %c0_26 = arith.constant 0 : index
    %72 = vector.load %arg4[%c0_25, %c0_26] : memref<8x128xf32, #tpu.memory_space<vmem>>, vector<8x128xf32>
    tpu.vector_store %arg4[%c0_25, %c0_26], %71 {strides = array<i32>} : memref<8x128xf32, #tpu.memory_space<vmem>>, vector<8x128xf32>,
    return
  }
  func.func @transform_0(%arg0: i32, %arg1: i32) -> (i32, i32, i32) {
    %c1_i32 = arith.constant 1 : i32
    %0 = arith.muli %arg0, %c1_i32 : i32
    %1 = arith.addi %0, %arg1 : i32
    %c0_i32 = arith.constant 0 : i32
    %2 = arith.minsi %1, %c0_i32 : i32
    %c0_i32_0 = arith.constant 0 : i32
    %c0_i32_1 = arith.constant 0 : i32
    %c0_i32_2 = arith.constant 0 : i32
    return %2, %c0_i32_0, %c0_i32_1 : i32, i32, i32
  }
  func.func @transform_1(%arg0: i32, %arg1: i32) -> (i32, i32, i32) {
    %c1_i32 = arith.constant 1 : i32
    %0 = arith.muli %arg0, %c1_i32 : i32
    %1 = arith.addi %0, %arg1 : i32
    %c0_i32 = arith.constant 0 : i32
    %2 = arith.minsi %1, %c0_i32 : i32
    %c0_i32_0 = arith.constant 0 : i32
    %c0_i32_1 = arith.constant 0 : i32
    %c0_i32_2 = arith.constant 0 : i32
    return %2, %c0_i32_0, %c0_i32_1 : i32, i32, i32
  }
  func.func @transform_2(%arg0: i32, %arg1: i32) -> (i32, i32) {
    %c0_i32 = arith.constant 0 : i32
    %c0_i32_0 = arith.constant 0 : i32
    return %arg0, %c0_i32 : i32, i32
  }
}

</mosaic_0001>

<bundles_post_ra>
// kernel: tpu_custom_call.1
= control target key start
LH: loop header
LB: loop body
LE: loop exit
PB: predicated region body
PF: predicated region fallthrough
CT: control target
= control target key end

     0   :  { %7 = vsyncpa [#allocation3], 0  ;;  %s283_s0 = inlined_call_operand.hbm [shape: f32[2,8,128], index: 0, kind: input, shape index: {}]   ;;  %s284_s1 = inlined_call_operand.hbm [shape: f32[2,8,128], index: 1, kind: input, shape index: {}]   ;;  %s285_s2 = inlined_call_operand.hbm [shape: f32[8,128], index: 2, kind: output, shape index: {}]  }
   0x1   :  { %8 = vsyncpa [#allocation6], 0 }
   0x2   :  { %9 = vsyncpa [#allocation4], 0  ;;  %s20_s11 = sshll.u32 %s283_s0, 4  ;;  %s254_s12 = smov [#allocation2]   ;;  %s21_s11 = int_to_ptr.hbm [resolvable:$true] %s20_s11 }
   0x3   :  { %s22_s13 = sshll.u32 %s254_s12, 4  ;;  %s39_s16 = sshll.u32 %s284_s1, 4  ;;  %s23_s13 = int_to_ptr.vmem [resolvable:$true] %s22_s13  ;;  %s40_s16 = int_to_ptr.hbm [resolvable:$true] %s39_s16 }
   0x4   :  { %s255_s17 = smov 128   ;;  %s256_s18 = smov 8  }
   0x5   :  { %28 = dma.hbm_to_vmem [thread:$0]  %s21_s11, 256, %s23_s13, [#allocation3], %s255_s17, %s255_s17, %s256_s18  }
   0x6   :  { %s257_s19 = smov [#allocation5]  }
   0x7   :  { %s41_s20 = sshll.u32 %s257_s19, 4  ;;  %s42_s20 = int_to_ptr.vmem [resolvable:$true] %s41_s20 }
   0x8   :  { %47 = dma.hbm_to_vmem [thread:$0]  %s40_s16, 256, %s42_s20, [#allocation6], %s255_s17, %s255_s17, %s256_s18  }
   0x9   :  { %248 = dma.done.wait [#allocation3], 256  }
   0xa   :  { %249 = vsyncadd [#allocation3], 4294967040 }
   0xb   :  { %250 = dma.done.wait [#allocation6], 256  }
   0xc   :  { %251 = vsyncadd [#allocation6], 4294967040  ;;  %v70_v0 = vld [vmem:[#allocation2] sm:$0xff]  ;;  %v102_v1 = vld [vmem:[#allocation2 + $0x8] sm:$0xff]  ;;  %s258_s0 = smov [#allocation7]   ;;  %s143_s23 = sshll.u32 %s285_s2, 4  ;;  %s144_s23 = int_to_ptr.hbm [resolvable:$true] %s143_s23 }
   0xd   :  { %v72_v2 = vand.u32 2147483647, %v70_v0  ;;  %v105_v3 = vand.u32 2147483647, %v102_v1  ;;  %v71_v12 = vld [vmem:[#allocation5] sm:$0xff]  ;;  %v104_v15 = vld [vmem:[#allocation5 + $0x8] sm:$0xff] }
   0xe   :  { %v76_v17 = vmax.f32 %v70_v0, 0.0  ;;  %v77_v18 = vmul.f32 %v71_v12, %v70_v0  ;;  %v109_v21 = vmax.f32 %v102_v1, 0.0  ;;  %v110_v22 = vmul.f32 %v104_v15, %v102_v1  ;;  %s141_s1 = sshll.u32 %s258_s0, 4  ;;  %s142_s1 = int_to_ptr.vmem [resolvable:$true] %s141_s1 }
   0xf   :  { %v73_v4 = vsub.f32 0.0, %v72_v2  ;;  %v106_v5 = vsub.f32 0.0, %v105_v3  ;;  %v94_v35 = vsub.f32 1.0, %v71_v12  ;;  %v127_v38 = vsub.f32 1.0, %v104_v15 }
  0x10   :  { %v78_v26 = vsub.f32 %v76_v17, %v77_v18  ;;  %v111_v30 = vsub.f32 %v109_v21, %v110_v22 }
  0x11   :  { %v74_v6 = vmul.f32 1.442695, %v73_v4  ;;  %v107_v7 = vmul.f32 1.442695, %v106_v5  ;;  %v95_v41 = vadd.f32 %v94_v35, %v71_v12  ;;  %v128_v43 = vadd.f32 %v127_v38, %v104_v15 }
  0x13   :  { %164 = vpow2.f32 %v74_v6  ;;  %v96_v44 = vmul.f32 %v95_v41, %v71_v12  ;;  %v129_v45 = vmul.f32 %v128_v43, %v104_v15 }
  0x14   :  { %166 = vpow2.f32 %v107_v7 }
  0x15   :  { %v97_v49 = vmul.f32 0.25, %v96_v44  ;;  %v130_v51 = vmul.f32 0.25, %v129_v45 }
  0x19   :  { %v165_v8 = vpop.eup %164 }
  0x1a   :  { %v167_v9 = vpop.eup %166  ;;  %v79_v10 = vadd.f32 1.0, %v165_v8  ;;  %v82_v11 = vmul.f32 -0.5, %v165_v8  ;;  %v85_v19 = vand.u32 2147483647, %v165_v8 }
  0x1b   :  { %v112_v13 = vadd.f32 1.0, %v167_v9  ;;  %v115_v14 = vmul.f32 -0.5, %v167_v9  ;;  %v118_v23 = vand.u32 2147483647, %v167_v9 }
  0x1c   :  { %168 = vlog2.f32 %v79_v10  ;;  %v83_v16 = vadd.f32 1.0, %v82_v11  ;;  %vm86_vm0 = vcmp.lt.f32.partialorder %v85_v19, 0.0004427343 }
  0x1d   :  { %170 = vlog2.f32 %v112_v13  ;;  %v116_v20 = vadd.f32 1.0, %v115_v14  ;;  %vm119_vm1 = vcmp.lt.f32.partialorder %v118_v23, 0.0004427343 }
  0x1e   :  { %v84_v24 = vmul.f32 %v165_v8, %v83_v16 }
  0x1f   :  { %v117_v27 = vmul.f32 %v167_v9, %v116_v20 }
  0x22   :  { %v169_v25 = vpop.eup %168 }
  0x23   :  { %v171_v28 = vpop.eup %170  ;;  %v81_v29 = vmul.f32 0.6931472, %v169_v25 }
  0x24   :  { %v114_v31 = vmul.f32 0.6931472, %v171_v28 }
  0x25   :  { %v87_v32 = vsel %vm86_vm0, %v84_v24, %v81_v29 }
  0x26   :  { %v88_v33 = vadd.f32 %v87_v32, %v78_v26  ;;  %v120_v34 = vsel %vm119_vm1, %v117_v27, %v114_v31 }
  0x27   :  { %v121_v36 = vadd.f32 %v120_v34, %v111_v30 }
  0x28   :  { %v89_v37 = vsub.f32 0.0, %v88_v33 }
  0x29   :  { %v122_v39 = vsub.f32 0.0, %v121_v36 }
  0x2a   :  { %v90_v40 = vmul.f32 1.442695, %v89_v37 }
  0x2b   :  { %v123_v42 = vmul.f32 1.442695, %v122_v39 }
  0x2c   :  { %172 = vpow2.f32 %v90_v40 }
  0x2d   :  { %174 = vpow2.f32 %v123_v42 }
  0x32   :  { %v173_v46 = vpop.eup %172 }
  0x33   :  { %v175_v47 = vpop.eup %174  ;;  %v92_v48 = vsub.f32 1.0, %v173_v46 }
  0x34   :  { %v125_v50 = vsub.f32 1.0, %v175_v47 }
  0x35   :  { %v93_v52 = vmul.f32 %v92_v48, %v92_v48 }
  0x36   :  { %v126_v53 = vmul.f32 %v125_v50, %v125_v50 }
  0x37   :  { %v98_v54 = vmul.f32 %v97_v49, %v93_v52 }
  0x38   :  { %v131_v55 = vmul.f32 %v130_v51, %v126_v53 }
  0x39   :  { %v99_v56 = vmul.f32 %v98_v54, %v88_v33 }
  0x3a   :  { %v132_v57 = vmul.f32 %v131_v55, %v121_v36 }
  0x3c   :  { %v133_v58 = vadd.f32 %v132_v57, %v99_v56 }
  0x3e   :  { %135 = vst [vmem:[#allocation7] sm:$0xff] %v133_v58 }
  0x3f   :  { %146 = dma.vmem_to_hbm [thread:$0]  %s142_s1, 128, %s144_s23, [#allocation4]  }
  0x40   :  { %252 = dma.done.wait [#allocation4], 128  }
  0x41   :  { %253 = vsyncadd [#allocation4], 4294967168 }
  0x42   :  { %151 = vsyncpa [#allocation3], 1 }
  0x43   :  { %152 = vsyncpa [#allocation6], 1 }
  0x44   :  { %153 = vsyncpa [#allocation4], 1 }

</bundles_post_ra>
